<compile_context>
chip_gen: v6e
topology: v6e:2x2x1
jax: 0.10.0
libtpu: 0.0.40
codegen_flags: <defaults>
</compile_context>

<pallas_src>
import jax
import jax.numpy as jnp
from jax.experimental import pallas as pl
from jax.experimental.pallas import tpu as pltpu


# ----------------------------------------------------------------------------
# Kernel: whole-batch slab (B*C_in, hw_tile) -> (B*C_out, hw_tile)
#   h = W1_blk @ x + b1 ; LeakyReLU(0.1) ; y = W2_blk @ h + b2
# w1p_ref = [W1_blk | b1]  (B*hidden, B*C_in + 1)
# w2p_ref = [W2_blk | b2]  (B*C_out,  B*hidden + 1)
# ----------------------------------------------------------------------------
def _mlp_kernel(x_ref, w1p_ref, w2p_ref, o_ref):
    k1 = x_ref.shape[0]                      # B*C_in
    k2 = w1p_ref.shape[0]                    # B*hidden

    x = x_ref[...]                           # (B*C_in, hw_tile), lane-dense
    w1 = w1p_ref[:, :k1]                     # (B*hidden, B*C_in)  block-diag
    b1 = w1p_ref[:, k1:]                     # (B*hidden, 1)

    h = jnp.dot(w1, x, preferred_element_type=jnp.float32) + b1
    h = jnp.where(h >= 0, h, 0.1 * h)        # LeakyReLU(0.1)

    w2 = w2p_ref[:, :k2]                     # (B*C_out, B*hidden) block-diag
    b2 = w2p_ref[:, k2:]                     # (B*C_out, 1)

    y = jnp.dot(w2, h, preferred_element_type=jnp.float32) + b2
    o_ref[...] = y.astype(o_ref.dtype)       # (B*C_out, hw_tile) unmasked store


# ----------------------------------------------------------------------------
# Wrapper: (B, C_in, H, W) -> (B, C_out, H, W).  Only free reshapes / tiny
# one-time parameter packing outside the kernel.
# ----------------------------------------------------------------------------
def mlp_forward(x, params, *, max_hw_tile=8192):
    B, C_in, H, W = x.shape
    HW = H * W
    hidden = params["w1"].shape[0]
    C_out = params["w2"].shape[0]

    # Lane-dim guardrail: HW must map densely onto 128 lanes.
    assert HW % 128 == 0, "H*W must be a multiple of 128 for lane-dense tiles"

    # VMEM guardrail (matters only if H*W scales up): tile HW so the f32
    # (B*hidden, hw_tile) intermediate + double-buffered I/O stay well inside
    # v7x's 64 MiB VMEM.  Today hw_tile == HW == 256 -> a single grid step.
    hw_tile = min(HW, max_hw_tile)
    while HW % hw_tile != 0:
        hw_tile //= 2
    assert hw_tile % 128 == 0
    n_hw = HW // hw_tile

    # Batch folded into sublanes (layout-preserving reshape).
    x2 = x.reshape(B * C_in, HW)                               # (8, 256)

    # Block-diagonal weights: one matmul per layer covers the whole batch.
    eye_b = jnp.eye(B, dtype=jnp.float32)
    w1_blk = jnp.kron(eye_b, params["w1"])                     # (B*hidden, B*C_in)
    w2_blk = jnp.kron(eye_b, params["w2"])                     # (B*C_out, B*hidden)
    b1_stk = jnp.tile(params["b1"], B).reshape(B * hidden, 1)
    b2_stk = jnp.tile(params["b2"], B).reshape(B * C_out, 1)

    # Pack bias as an extra weight column -> 3 input DMAs total.
    w1p = jnp.concatenate([w1_blk, b1_stk], axis=1)            # (64, 9)
    w2p = jnp.concatenate([w2_blk, b2_stk], axis=1)            # (8, 65)

    flops = 2 * B * HW * (C_in * hidden + hidden * C_out)
    bytes_accessed = 4 * (x2.size + w1p.size + w2p.size + B * C_out * HW)

    out = pl.pallas_call(
        _mlp_kernel,
        out_shape=jax.ShapeDtypeStruct((B * C_out, HW), jnp.float32),
        grid_spec=pl.GridSpec(
            grid=(n_hw,),                                      # == (1,) today
            in_specs=[
                pl.BlockSpec((B * C_in, hw_tile), lambda j: (0, j)),
                pl.BlockSpec((B * hidden, B * C_in + 1), lambda j: (0, 0)),
                pl.BlockSpec((B * C_out, B * hidden + 1), lambda j: (0, 0)),
            ],
            out_specs=pl.BlockSpec((B * C_out, hw_tile), lambda j: (0, j)),
        ),
        compiler_params=pltpu.CompilerParams(
            dimension_semantics=("arbitrary",),
        ),
        cost_estimate=pl.CostEstimate(
            flops=flops, transcendentals=0, bytes_accessed=bytes_accessed
        ),
    )(x2, w1p, w2p)

    return out.reshape(B, C_out, H, W)


# ----------------------------------------------------------------------------
# Pure-JAX reference (matches nn.Conv2d(k=1) -> LeakyReLU(0.1) -> Conv2d(k=1))
# ----------------------------------------------------------------------------
def reference_forward(x, params):
    h = jnp.einsum("oc,bchw->bohw", params["w1"], x, precision="highest")
    h = h + params["b1"][None, :, None, None]
    h = jnp.where(h >= 0, h, 0.1 * h)
    y = jnp.einsum("oc,bchw->bohw", params["w2"], h, precision="highest")
    y = y + params["b2"][None, :, None, None]
    return y


# ----------------------------------------------------------------------------
# Main
# ----------------------------------------------------------------------------
if __name__ == "__main__":
    B = 2
    in_features = 4
    hidden_features = 32
    out_features = 4            # defaults to in_features in the PyTorch module
    H = W = 16

    key = jax.random.PRNGKey(0)
    k_x, k_w1, k_b1, k_w2, k_b2 = jax.random.split(key, 5)

    x = jax.random.normal(k_x, (B, in_features, H, W), dtype=jnp.float32)

    # Conv2d 1x1 weight (out, in, 1, 1) stored as (out, in).
    # TODO(synk): trunc_normal_ init with network_depth-scaled std is init-time
    # only; forward semantics do not depend on it, so plain scaled normals here.
    params = {
        "w1": jax.random.normal(k_w1, (hidden_features, in_features),
                                dtype=jnp.float32) * 0.1,
        "b1": jax.random.normal(k_b1, (hidden_features,), dtype=jnp.float32) * 0.1,
        "w2": jax.random.normal(k_w2, (out_features, hidden_features),
                                dtype=jnp.float32) * 0.1,
        "b2": jax.random.normal(k_b2, (out_features,), dtype=jnp.float32) * 0.1,
    }

    out = mlp_forward(x, params)
    out = jax.block_until_ready(out)

    ref = reference_forward(x, params)
    assert out.shape == (B, out_features, H, W)
    assert jnp.allclose(out, ref, atol=1e-4, rtol=1e-4), "mismatch vs reference"

    print("KERNEL_OK")
</pallas_src>

<mosaic_0001>
module attributes {stable_mosaic.version = 11 : i64} {
  func.func @_mlp_kernel(%arg0: i32, %arg1: memref<8x256xf32, #tpu.memory_space<vmem>>, %arg2: memref<64x9xf32, #tpu.memory_space<vmem>>, %arg3: memref<8x65xf32, #tpu.memory_space<vmem>>, %arg4: memref<8x256xf32, #tpu.memory_space<vmem>>) attributes {dimension_semantics = [#tpu.dimension_semantics<arbitrary>], iteration_bounds = array<i64: 1>, scalar_prefetch = 0 : i64, scratch_operands = 0 : i64, tpu.core_type = #tpu.core_type<tc>, window_params = [{transform_indices = @transform_0, window_bounds = array<i64: 8, 256>}, {pipeline_mode = #tpu.pipeline_mode<synchronous>, transform_indices = @transform_1, window_bounds = array<i64: 64, 9>}, {pipeline_mode = #tpu.pipeline_mode<synchronous>, transform_indices = @transform_2, window_bounds = array<i64: 8, 65>}, {transform_indices = @transform_3, window_bounds = array<i64: 8, 256>}]} {
    %c0 = arith.constant 0 : index
    %c0_0 = arith.constant 0 : index
    %0 = vector.load %arg1[%c0, %c0_0] : memref<8x256xf32, #tpu.memory_space<vmem>>, vector<8x256xf32>
    %c0_1 = arith.constant 0 : index
    %c0_2 = arith.constant 0 : index
    %1 = vector.load %arg2[%c0_1, %c0_2] : memref<64x9xf32, #tpu.memory_space<vmem>>, vector<64x8xf32>
    %c0_3 = arith.constant 0 : index
    %c8 = arith.constant 8 : index
    %2 = vector.load %arg2[%c0_3, %c8] : memref<64x9xf32, #tpu.memory_space<vmem>>, vector<64x1xf32>
    %cst = arith.constant dense<0.000000e+00> : vector<64x256xf32>
    %3 = tpu.matmul %1, %0, %cst {dimension_numbers = #tpu.dot_dimension_numbers<[1], [0], [0], [1], [0, 0, 1, 1], [], []>} : vector<64x8xf32>, vector<8x256xf32>, vector<64x256xf32> -> vector<64x256xf32>
    %4 = vector.broadcast %2 : vector<64x1xf32> to vector<64x256xf32>
    %5 = arith.addf %3, %4 : vector<64x256xf32>
    %cst_4 = arith.constant 0.000000e+00 : f32
    %6 = vector.broadcast %cst_4 : f32 to vector<64x256xf32>
    %7 = arith.cmpf oge, %5, %6 : vector<64x256xf32>
    %cst_5 = arith.constant 1.000000e-01 : f32
    %8 = vector.broadcast %cst_5 : f32 to vector<64x256xf32>
    %9 = arith.mulf %8, %5 : vector<64x256xf32>
    %10 = arith.select %7, %5, %9 : vector<64x256xi1>, vector<64x256xf32>
    %c0_6 = arith.constant 0 : index
    %c0_7 = arith.constant 0 : index
    %11 = vector.load %arg3[%c0_6, %c0_7] : memref<8x65xf32, #tpu.memory_space<vmem>>, vector<8x64xf32>
    %c0_8 = arith.constant 0 : index
    %c64 = arith.constant 64 : index
    %12 = vector.load %arg3[%c0_8, %c64] : memref<8x65xf32, #tpu.memory_space<vmem>>, vector<8x1xf32>
    %cst_9 = arith.constant dense<0.000000e+00> : vector<8x256xf32>
    %13 = tpu.matmul %11, %10, %cst_9 {dimension_numbers = #tpu.dot_dimension_numbers<[1], [0], [0], [1], [0, 0, 1, 1], [], []>} : vector<8x64xf32>, vector<64x256xf32>, vector<8x256xf32> -> vector<8x256xf32>
    %14 = vector.broadcast %12 : vector<8x1xf32> to vector<8x256xf32>
    %15 = arith.addf %13, %14 : vector<8x256xf32>
    %c0_10 = arith.constant 0 : index
    %c0_11 = arith.constant 0 : index
    %16 = vector.load %arg4[%c0_10, %c0_11] : memref<8x256xf32, #tpu.memory_space<vmem>>, vector<8x256xf32>
    tpu.vector_store %arg4[%c0_10, %c0_11], %15 {strides = array<i32>} : memref<8x256xf32, #tpu.memory_space<vmem>>, vector<8x256xf32>,
    return
  }
  func.func @transform_0(%arg0: i32) -> (i32, i32) {
    %c0_i32 = arith.constant 0 : i32
    %c0_i32_0 = arith.constant 0 : i32
    return %c0_i32, %arg0 : i32, i32
  }
  func.func @transform_1(%arg0: i32) -> (i32, i32) {
    %c0_i32 = arith.constant 0 : i32
    %c0_i32_0 = arith.constant 0 : i32
    %c0_i32_1 = arith.constant 0 : i32
    return %c0_i32, %c0_i32_0 : i32, i32
  }
  func.func @transform_2(%arg0: i32) -> (i32, i32) {
    %c0_i32 = arith.constant 0 : i32
    %c0_i32_0 = arith.constant 0 : i32
    %c0_i32_1 = arith.constant 0 : i32
    return %c0_i32, %c0_i32_0 : i32, i32
  }
  func.func @transform_3(%arg0: i32) -> (i32, i32) {
    %c0_i32 = arith.constant 0 : i32
    %c0_i32_0 = arith.constant 0 : i32
    return %c0_i32, %arg0 : i32, i32
  }
}

</mosaic_0001>

<bundles_post_ra>
// kernel: tpu_custom_call.1
= control target key start
LH: loop header
LB: loop body
LE: loop exit
PB: predicated region body
PF: predicated region fallthrough
CT: control target
= control target key end

     0   :  { %vm65_vm0 = vcmask 64512   ;;  %v377_v3 = vmov 0.0   ;;  %v378_v5 = vmov 8   ;;  %s456_s0 = inlined_call_operand.vmem [shape: f32[8,256], index: 0, kind: input, shape index: {}]   ;;  %s457_s1 = inlined_call_operand.vmem [shape: f32[64,9], index: 1, kind: input, shape index: {}]   ;;  %s458_s2 = inlined_call_operand.vmem [shape: f32[8,65], index: 2, kind: input, shape index: {}]   ;;  %s459_s3 = inlined_call_operand.hbm [shape: f32[8,256], index: 3, kind: output, shape index: {}]  }
   0x1   :  { %v16_v0 = vld [vmem:[%s456_s0 + $0x8] sm:$0xff]  ;;  %v15_v1 = vld [vmem:[%s456_s0] sm:$0xff]  ;;  %146 = vmatprep.mubr.f32.mxu0 %v377_v3  ;;  %353 = vset.pattern.permute.xlu1 %v378_v5 }
   0x2   :  { %v17_v2 = vld [vmem:[%s457_s1] sm:$0xff]  ;;  %112 = vmatprep.subr.mxu0 %v16_v0  ;;  %v22_v4 = vld [vmem:[%s457_s1 + $0x28] sm:$0xff] }
   0x3   :  { %113 = vmatpush1.msra.mxu0 %v15_v1  ;;  %52 = vperm.xlu1 %353, %v22_v4  }
   0x4   :  { %339 = vmatmul.mubr.msk.f32.vlgmr.msra.gmra.mxu0 %vm65_vm0, %v17_v2 }
   0x5   :  { %8 = vsyncpa [#allocation3], 0  ;;  %152 = vmatprep.mubr.f32.mxu0 %v377_v3  ;;  %v18_v6 = vld [vmem:[%s457_s1 + $0x8] sm:$0xff]  ;;  %v24_v7 = vld [vmem:[%s457_s1 + $0x38] sm:$0xff]  ;;  %352 = vset.pattern.permute.xlu0 %v378_v5  ;;  %v379_v13 = vmov 64  }
   0x6   :  { %62 = vperm.xlu0 %352, %v24_v7   ;;  %316 = vmatprep.mubr.f32.mxu1 %v377_v3  ;;  %v21_v8 = vld [vmem:[%s457_s1 + $0x20] sm:$0xff]  ;;  %v19_v9 = vld [vmem:[%s457_s1 + $0x10] sm:$0xff]  ;;  %v20_v11 = vld [vmem:[%s457_s1 + $0x18] sm:$0xff] }
   0x7   :  { %47 = vperm.xlu1 %353, %v21_v8   ;;  %v23_v10 = vld [vmem:[%s457_s1 + $0x30] sm:$0xff]  ;;  %v442_v12 = vld [vmem:[%s458_s2] sm:$0xff]  ;;  %s380_s1 = smov [#allocation2]  }
   0x8   :  { %340 = vmatmul.mubr.msk.f32.gmra.mxu0 %vm65_vm0, %v18_v6  ;;  %s331_s2 = sshll.u32 %s380_s1, 4  ;;  %s332_s2 = int_to_ptr.vmem [resolvable:$true] %s331_s2 }
   0x9   :  { %158 = vmatprep.mubr.f32.mxu0 %v377_v3  ;;  %s355_s6 = scalar_lea.vmem %s332_s2, 256  ;;  %p360_p1 = scmp.lt.s32.totalorder %s332_s2, %s332_s2 }
   0xa   :  { %57 = vperm.xlu0 %352, %v23_v10   ;;  %p356_p0 = scmp.ne.s32.totalorder %s332_s2, %s355_s6  ;;  %p361_p2 = scmp.lt.s32.totalorder %s355_s6, %s355_s6 }
   0xb   :  { %37 = vperm.xlu1 %353, %v19_v9  }
   0xc   :  { %341 = vmatmul.mubr.msk.f32.gmra.mxu0 %vm65_vm0, %v19_v9  ;;  %p362_p3 = por %p361_p2, %p360_p1 }
   0xd   :  { %164 = vmatprep.mubr.f32.mxu0 %v377_v3 }
   0xe   :  { %42 = vperm.xlu0 %352, %v20_v11   ;;  %p363_p4 = pnand %p362_p3, %p356_p0 }
   0xf   :  { %27 = vperm.xlu1 %353, %v17_v2  }
  0x10   :  { %342 = vmatmul.mubr.msk.f32.gmra.mxu0 %vm65_vm0, %v20_v11 }
  0x11   :  { %170 = vmatprep.mubr.f32.mxu0 %v377_v3 }
  0x12   :  { %32 = vperm.xlu0 %352, %v18_v6  }
  0x14   :  { %343 = vmatmul.mubr.msk.f32.gmra.mxu0 %vm65_vm0, %v21_v8 }
  0x15   :  { %176 = vmatprep.mubr.f32.mxu0 %v377_v3 }
  0x16   :  { %354 = vset.pattern.permute.xlu0 %v379_v13 }
  0x17   :  { %246 = vperm.xlu0 %354, %v442_v12  }
  0x18   :  { %344 = vmatmul.mubr.msk.f32.gmra.mxu0 %vm65_vm0, %v22_v4 }
  0x19   :  { %182 = vmatprep.mubr.f32.mxu0 %v377_v3 }
  0x1c   :  { %345 = vmatmul.mubr.msk.f32.gmra.mxu0 %vm65_vm0, %v23_v10 }
  0x1d   :  { %188 = vmatprep.mubr.f32.mxu0 %v377_v3 }
  0x20   :  { %346 = vmatmul.mubr.msk.f32.gmra.mxu0 %vm65_vm0, %v24_v7 }
  0x7e   :  { %v53_v26 = vpop.permute.xlu1 %52 }
  0x81   :  { %v63_v24 = vpop.permute.xlu0 %62 }
  0x82   :  { %v48_v31 = vpop.permute.xlu1 %47 }
  0x85   :  { %v58_v29 = vpop.permute.xlu0 %57 }
  0x86   :  { %v38_v43 = vpop.permute.xlu1 %37 }
  0x89   :  { %v43_v37 = vpop.permute.xlu0 %42 }
  0x8a   :  { %v28_v61 = vpop.permute.xlu1 %27 }
  0x8d   :  { %v33_v54 = vpop.permute.xlu0 %32 }
  0xc4   :  { %v445_v14 = vpop.f32.mrf.mxu0 }
  0xc5   :  { %v149_v7 = vadd.f32 %v445_v14, %v28_v61 }
  0xc6   :  { %v447_v15 = vpop.f32.mrf.mxu0 }
  0xc7   :  { %v151_v4 = vadd.f32 %v447_v15, %v28_v61  ;;  %vm195_vm0 = vcmp.ge.f32.partialorder %v149_v7, 0.0 }
  0xc8   :  { %v154_v16 = vpop.f32.mrf.mxu0 }
  0xc9   :  { %v155_v1 = vadd.f32 %v154_v16, %v33_v54  ;;  %vm196_vm15 = vcmp.ge.f32.partialorder %v151_v4, 0.0 }
  0xca   :  { %v156_v17 = vpop.f32.mrf.mxu0 }
  0xcb   :  { %v157_v62 = vadd.f32 %v156_v17, %v33_v54  ;;  %v213_v13 = vmul.f32 0.1, %v155_v1  ;;  %v212_v17 = vmul.f32 0.1, %v151_v4  ;;  %vm197_vm14 = vcmp.ge.f32.partialorder %v155_v1, 0.0 }
  0xcc   :  { %v160_v18 = vpop.f32.mrf.mxu0 }
  0xcd   :  { %v161_v58 = vadd.f32 %v160_v18, %v38_v43  ;;  %v214_v10 = vmul.f32 0.1, %v157_v62  ;;  %vm198_vm13 = vcmp.ge.f32.partialorder %v157_v62, 0.0  ;;  %v211_v18 = vmul.f32 0.1, %v149_v7 }
  0xce   :  { %v162_v19 = vpop.f32.mrf.mxu0 }
  0xcf   :  { %v163_v55 = vadd.f32 %v162_v19, %v38_v43  ;;  %v215_v8 = vmul.f32 0.1, %v161_v58  ;;  %vm199_vm12 = vcmp.ge.f32.partialorder %v161_v58, 0.0  ;;  %v230_v14 = vsel %vm198_vm13, %v157_v62, %v214_v10 }
  0xd0   :  { %v166_v20 = vpop.f32.mrf.mxu0 }
  0xd1   :  { %v167_v51 = vadd.f32 %v166_v20, %v43_v37  ;;  %v216_v5 = vmul.f32 0.1, %v163_v55  ;;  %vm200_vm11 = vcmp.ge.f32.partialorder %v163_v55, 0.0  ;;  %v231_v19 = vsel %vm199_vm12, %v161_v58, %v215_v8 }
  0xd2   :  { %v168_v21 = vpop.f32.mrf.mxu0  ;;  %v229_v20 = vsel %vm197_vm14, %v155_v1, %v213_v13 }
  0xd3   :  { %v169_v48 = vadd.f32 %v168_v21, %v43_v37  ;;  %v217_v2 = vmul.f32 0.1, %v167_v51  ;;  %vm201_vm10 = vcmp.ge.f32.partialorder %v167_v51, 0.0  ;;  %v232_v15 = vsel %vm200_vm11, %v163_v55, %v216_v5 }
  0xd4   :  { %v172_v22 = vpop.f32.mrf.mxu0  ;;  %v228_v21 = vsel %vm196_vm15, %v151_v4, %v212_v17 }
  0xd5   :  { %v173_v46 = vadd.f32 %v172_v22, %v48_v31  ;;  %v218_v63 = vmul.f32 0.1, %v169_v48  ;;  %vm202_vm9 = vcmp.ge.f32.partialorder %v169_v48, 0.0  ;;  %v233_v16 = vsel %vm201_vm10, %v167_v51, %v217_v2 }
  0xd6   :  { %v174_v23 = vpop.f32.mrf.mxu0  ;;  %v227_v22 = vsel %vm195_vm0, %v149_v7, %v211_v18 }
  0xd7   :  { %v175_v40 = vadd.f32 %v174_v23, %v48_v31  ;;  %v219_v59 = vmul.f32 0.1, %v173_v46  ;;  %vm203_vm8 = vcmp.ge.f32.partialorder %v173_v46, 0.0  ;;  %v234_v11 = vsel %vm202_vm9, %v169_v48, %v218_v63  ;;  %v247_v23 = vpop.permute.xlu0 %246 }
  0xd8   :  { %v178_v25 = vpop.f32.mrf.mxu0 }
  0xd9   :  { %v179_v41 = vadd.f32 %v178_v25, %v53_v26  ;;  %v220_v56 = vmul.f32 0.1, %v175_v40  ;;  %vm204_vm7 = vcmp.ge.f32.partialorder %v175_v40, 0.0  ;;  %v235_v9 = vsel %vm203_vm8, %v173_v46, %v219_v59 }
  0xda   :  { %v180_v27 = vpop.f32.mrf.mxu0 }
  0xdb   :  { %v181_v38 = vadd.f32 %v180_v27, %v53_v26  ;;  %v221_v52 = vmul.f32 0.1, %v179_v41  ;;  %vm205_vm6 = vcmp.ge.f32.partialorder %v179_v41, 0.0  ;;  %v236_v6 = vsel %vm204_vm7, %v175_v40, %v220_v56 }
  0xdc   :  { %v184_v28 = vpop.f32.mrf.mxu0 }
  0xdd   :  { %v185_v35 = vadd.f32 %v184_v28, %v58_v29  ;;  %v222_v49 = vmul.f32 0.1, %v181_v38  ;;  %vm206_vm5 = vcmp.ge.f32.partialorder %v181_v38, 0.0  ;;  %v237_v3 = vsel %vm205_vm6, %v179_v41, %v221_v52 }
  0xde   :  { %v186_v30 = vpop.f32.mrf.mxu0 }
  0xdf   :  { %v187_v33 = vadd.f32 %v186_v30, %v58_v29  ;;  %v223_v47 = vmul.f32 0.1, %v185_v35  ;;  %vm207_vm4 = vcmp.ge.f32.partialorder %v185_v35, 0.0  ;;  %v238_v0 = vsel %vm206_vm5, %v181_v38, %v222_v49 }
  0xe0   :  { %v190_v32 = vpop.f32.mrf.mxu0 }
  0xe1   :  { %v191_v34 = vadd.f32 %v190_v32, %v63_v24  ;;  %v224_v44 = vmul.f32 0.1, %v187_v33  ;;  %vm208_vm3 = vcmp.ge.f32.partialorder %v187_v33, 0.0  ;;  %v239_v60 = vsel %vm207_vm4, %v185_v35, %v223_v47 }
  0xe2   :  { %v192_v36 = vpop.f32.mrf.mxu0 }
  0xe3   :  { %v193_v39 = vadd.f32 %v192_v36, %v63_v24  ;;  %v225_v42 = vmul.f32 0.1, %v191_v34  ;;  %vm209_vm2 = vcmp.ge.f32.partialorder %v191_v34, 0.0  ;;  %v240_v57 = vsel %vm208_vm3, %v187_v33, %v224_v44 }
  0xe5   :  { %vm210_vm1 = vcmp.ge.f32.partialorder %v193_v39, 0.0  ;;  %v226_v45 = vmul.f32 0.1, %v193_v39  ;;  %v241_v53 = vsel %vm209_vm2, %v191_v34, %v225_v42 }
  0xe7   :  { %v242_v50 = vsel %vm210_vm1, %v193_v39, %v226_v45  ;;  %vm249_vm1 = vcmask 523264  }
  0xe8   :  { %268 = vmatprep.subr.mxu1 %v242_v50 }
  0xe9   :  { %269 = vmatpush1.msra.mxu1 %v241_v53 }
  0xea   :  { %270 = vmatprep.subr.mxu1 %v240_v57 }
  0xeb   :  { %271 = vmatpush1.msra.mxu1 %v239_v60 }
  0xec   :  { %272 = vmatprep.subr.mxu1 %v238_v0 }
  0xed   :  { %273 = vmatpush1.msra.mxu1 %v237_v3 }
  0xee   :  { %274 = vmatprep.subr.mxu1 %v236_v6 }
  0xef   :  { %275 = vmatpush1.msra.mxu1 %v235_v9 }
  0xf0   :  { %276 = vmatprep.subr.mxu1 %v234_v11 }
  0xf1   :  { %277 = vmatpush1.msra.mxu1 %v233_v16 }
  0xf2   :  { %278 = vmatprep.subr.mxu1 %v232_v15 }
  0xf3   :  { %279 = vmatpush1.msra.mxu1 %v231_v19 }
  0xf4   :  { %280 = vmatprep.subr.mxu1 %v230_v14 }
  0xf5   :  { %281 = vmatpush1.msra.mxu1 %v229_v20 }
  0xf6   :  { %282 = vmatprep.subr.mxu1 %v228_v21 }
  0xf7   :  { %283 = vmatpush1.msra.mxu1 %v227_v22 }
  0xf8   :  { %347 = vmatmul.mubr.msk.f32.vlgmr.msra.gmra.mxu1 %vm249_vm1, %v442_v12 }
 0x1b8   :  { %v318_v24 = vpop.f32.mrf.mxu1 }
 0x1b9   :  { %v319_v25 = vadd.f32 %v318_v24, %v247_v23 }
 0x1ba   :  { %v320_v26 = vpop.f32.mrf.mxu1 }
 0x1bb   :  { %323 = vst [vmem:[#allocation2] sm:$0xff] %v319_v25  ;;  %v321_v27 = vadd.f32 %v320_v26, %v247_v23 }
 0x1bd   :  { %324 = vst [vmem:[#allocation2 + $0x8] sm:$0xff] %v321_v27 }
 0x1be   :  { %366 = shalt.err (!%p363_p4)
}
 0x1bf   :  { %334 = dma.vmem_to_hbm [thread:$0]  %s332_s2, 256, %s459_s3, [#allocation3]  }
 0x1c0   :  { %375 = dma.done.wait [#allocation3], 256  }
 0x1c1   :  { %376 = vsyncadd [#allocation3], 4294967040 }
 0x1c2   :  { %338 = vsyncpa [#allocation3], 1 }

</bundles_post_ra>
